<compile_context>
chip_gen: v7x
topology: tpu7x:2x2x1
jax: 0.10.0
libtpu: 0.0.40
codegen_flags: <defaults>
</compile_context>

<pallas_src>
import functools
import math

import jax
import jax.numpy as jnp
from jax.experimental import pallas as pl
from jax.experimental.pallas import tpu as pltpu


# ----------------------------- kernel body ---------------------------------

def _spectral_compress_kernel(x_ref, o_ref, *, threshold, inv_ratio, offset):
    x = x_ref[...]
    thr = jnp.asarray(threshold, dtype=x.dtype)
    compressed = (x * jnp.asarray(inv_ratio, dtype=x.dtype)
                  + jnp.asarray(offset, dtype=x.dtype))
    # where (not minimum): at/below the knee the output is bit-exactly x.
    o_ref[...] = jnp.where(x > thr, compressed, x)


# ----------------------------- helpers ---------------------------------------

_SMALL_INPUT_BYTES = 256 * 1024   # below this, fused XLA elementwise wins
_SUBLANE_BYTES = 32               # sublane packing granularity (bytes)
_MIN_GRID_STEPS = 4               # keep both v7x TensorCores busy


def _compress_ref(x, threshold, ratio):
    """Pure-JAX reference matching the PyTorch forward (also the fast path)."""
    return jnp.where(x > threshold, threshold + (x - threshold) / ratio, x)


def _pick_lane_width(n: int) -> int:
    """Largest lane-dense width from {1024,512,256,128} dividing n, else 512."""
    for lane in (1024, 512, 256, 128):
        if n % lane == 0:
            return lane
    return 512


def _sublane_granularity(dtype) -> int:
    itemsize = jnp.dtype(dtype).itemsize
    return max(8, _SUBLANE_BYTES // itemsize)   # f32 -> 8, bf16 -> 16, fp8 -> 32


def _target_block_bytes() -> int:
    """Generation-aware block size: bigger blocks only where HBM is fast (v7x)."""
    try:
        kind = jax.devices()[0].device_kind.lower()
    except Exception:
        return 1 << 20
    if "tpu" in kind and "7" in kind:     # TPU v7x: 3.2 TB/s HBM
        return 4 << 20                    # 4 live bufs = 16 MiB, fits scoped VMEM
    return 1 << 20                        # v5e/v6e: 1 MiB already near roofline


# ----------------------------- public wrapper -------------------------------

def spectral_compressor(mel_spectrogram: jax.Array,
                        compression_threshold: float = 0.7,
                        compression_ratio: float = 3.0) -> jax.Array:
    """Pallas TPU equivalent of SpectralCompressor.forward (any input shape)."""
    dtype = mel_spectrogram.dtype
    if not jnp.issubdtype(dtype, jnp.floating):
        raise TypeError(f"spectral_compressor expects a floating dtype, got {dtype}")

    threshold = float(compression_threshold)
    ratio = float(compression_ratio)
    inv_ratio = 1.0 / ratio
    offset = threshold * (1.0 - inv_ratio)

    orig_shape = mel_spectrogram.shape
    n = math.prod(orig_shape)
    itemsize = jnp.dtype(dtype).itemsize

    # Small-input fast path: custom-call launch + plumbing dominates below this.
    if n == 0 or n * itemsize < _SMALL_INPUT_BYTES:
        return _compress_ref(mel_spectrogram, threshold, ratio)

    # Lane-aligned bulk (zero-copy 2-D view) + tiny tail handled in plain JAX.
    lane = _pick_lane_width(n)
    bulk = (n // lane) * lane
    tail = n - bulk
    rows = bulk // lane

    flat = mel_spectrogram.reshape(-1)
    bulk_flat = flat if tail == 0 else flat[:bulk]
    x2d = bulk_flat.reshape(rows, lane)

    # Row tile: ~target-block bytes, multiple of the sublane granularity,
    # capped so the 1-D "parallel" grid has >= _MIN_GRID_STEPS steps (megacore).
    sub = _sublane_granularity(dtype)
    bytes_per_row = lane * itemsize
    target_rows = max(sub, (_target_block_bytes() // bytes_per_row) // sub * sub)

    if rows <= sub:
        block_rows = rows                         # full-extent block, always legal
    else:
        block_rows = min(rows, target_rows)
        if rows >= _MIN_GRID_STEPS * sub:
            cap = max(sub, (pl.cdiv(rows, _MIN_GRID_STEPS) // sub) * sub)
            block_rows = min(block_rows, cap)
        block_rows = max(sub, (block_rows // sub) * sub)

    grid = (pl.cdiv(rows, block_rows),)           # partial last block is masked

    kernel = functools.partial(
        _spectral_compress_kernel,
        threshold=threshold, inv_ratio=inv_ratio, offset=offset)

    out2d = pl.pallas_call(
        kernel,
        out_shape=jax.ShapeDtypeStruct((rows, lane), dtype),
        grid=grid,
        in_specs=[pl.BlockSpec((block_rows, lane), lambda i: (i, 0))],
        out_specs=pl.BlockSpec((block_rows, lane), lambda i: (i, 0)),
        compiler_params=pltpu.CompilerParams(
            dimension_semantics=("parallel",),
            vmem_limit_bytes=32 * 1024 * 1024,
        ),
    )(x2d)

    out_flat = out2d.reshape(-1)
    if tail:
        tail_out = _compress_ref(flat[bulk:], threshold, ratio)
        out_flat = jnp.concatenate([out_flat, tail_out])
    return out_flat.reshape(orig_shape)


# ----------------------------- self-test -------------------------------------

if __name__ == "__main__":
    key = jax.random.PRNGKey(0)
    k1, k2, k3 = jax.random.split(key, 3)
    thr, ratio = 0.7, 3.0

    # Case 1: lane-aligned (2*80*512 elems = 320 KiB f32) -> Pallas path.
    mel_a = jax.random.uniform(k1, (2, 80, 512), jnp.float32, minval=-1.0, maxval=2.0)
    out_a = jax.block_until_ready(spectral_compressor(mel_a, thr, ratio))
    ref_a = _compress_ref(mel_a, thr, ratio)
    assert out_a.shape == mel_a.shape and out_a.dtype == mel_a.dtype
    assert jnp.allclose(out_a, ref_a, atol=1e-6, rtol=1e-6), "mismatch (aligned)"

    # Case 2: unaligned element count (2*80*437 = 69920) -> bulk + tail path.
    mel_b = jax.random.uniform(k2, (2, 80, 437), jnp.float32, minval=-1.0, maxval=2.0)
    out_b = jax.block_until_ready(spectral_compressor(mel_b, thr, ratio))
    ref_b = _compress_ref(mel_b, thr, ratio)
    assert out_b.shape == mel_b.shape and out_b.dtype == mel_b.dtype
    assert jnp.allclose(out_b, ref_b, atol=1e-6, rtol=1e-6), "mismatch (unaligned)"

    # Case 3: tiny input -> small-input fast path (no Pallas launch).
    mel_c = jax.random.uniform(k3, (2, 16, 50), jnp.float32, minval=-1.0, maxval=2.0)
    out_c = jax.block_until_ready(spectral_compressor(mel_c, thr, ratio))
    ref_c = _compress_ref(mel_c, thr, ratio)
    assert out_c.shape == mel_c.shape and out_c.dtype == mel_c.dtype
    assert jnp.allclose(out_c, ref_c, atol=1e-6, rtol=1e-6), "mismatch (tiny)"

    print("KERNEL_OK")
</pallas_src>

<mosaic_0001>
module attributes {stable_mosaic.version = 11 : i64} {
  func.func @_spectral_compress_kernel(%arg0: i32, %arg1: memref<16x1024xf32, #tpu.memory_space<vmem>>, %arg2: memref<16x1024xf32, #tpu.memory_space<vmem>>) attributes {dimension_semantics = [#tpu.dimension_semantics<parallel>], iteration_bounds = array<i64: 5>, scalar_prefetch = 0 : i64, scratch_operands = 0 : i64, tpu.core_type = #tpu.core_type<tc>, window_params = [{transform_indices = @transform_0, window_bounds = array<i64: 16, 1024>}, {transform_indices = @transform_1, window_bounds = array<i64: 16, 1024>}]} {
    %c0 = arith.constant 0 : index
    %c0_0 = arith.constant 0 : index
    %0 = vector.load %arg1[%c0, %c0_0] : memref<16x1024xf32, #tpu.memory_space<vmem>>, vector<16x1024xf32>
    %cst = arith.constant 0.333333343 : f32
    %1 = vector.broadcast %cst : f32 to vector<16x1024xf32>
    %2 = arith.mulf %0, %1 : vector<16x1024xf32>
    %cst_1 = arith.constant 0.466666669 : f32
    %3 = vector.broadcast %cst_1 : f32 to vector<16x1024xf32>
    %4 = arith.addf %2, %3 : vector<16x1024xf32>
    %cst_2 = arith.constant 0.699999988 : f32
    %5 = vector.broadcast %cst_2 : f32 to vector<16x1024xf32>
    %6 = arith.cmpf ogt, %0, %5 : vector<16x1024xf32>
    %7 = arith.select %6, %4, %0 : vector<16x1024xi1>, vector<16x1024xf32>
    %c0_3 = arith.constant 0 : index
    %c0_4 = arith.constant 0 : index
    %8 = vector.load %arg2[%c0_3, %c0_4] : memref<16x1024xf32, #tpu.memory_space<vmem>>, vector<16x1024xf32>
    tpu.vector_store %arg2[%c0_3, %c0_4], %7 {strides = array<i32>} : memref<16x1024xf32, #tpu.memory_space<vmem>>, vector<16x1024xf32>,
    return
  }
  func.func @transform_0(%arg0: i32) -> (i32, i32) {
    %c0_i32 = arith.constant 0 : i32
    %c0_i32_0 = arith.constant 0 : i32
    return %arg0, %c0_i32 : i32, i32
  }
  func.func @transform_1(%arg0: i32) -> (i32, i32) {
    %c0_i32 = arith.constant 0 : i32
    %c0_i32_0 = arith.constant 0 : i32
    return %arg0, %c0_i32 : i32, i32
  }
}

</mosaic_0001>

<bundles_post_ra>
// kernel: tpu_custom_call.1
= control target key start
LH: loop header
LB: loop body
LE: loop exit
PB: predicated region body
PF: predicated region fallthrough
CT: control target
= control target key end

     0   :  { %6 = vsyncpa [#allocation3], 0  ;;  %s712_s0 = inlined_call_operand.hbm [shape: f32[80,1024], index: 0, kind: input, shape index: {}]   ;;  %s713_s1 = inlined_call_operand.hbm [shape: f32[80,1024], index: 1, kind: output, shape index: {}]  }
   0x1   :  { %8 = vsyncpa [#allocation3 + $0x1], 0 }
   0x2   :  { %9 = vsyncpa [#allocation4], 0 }
   0x3   :  { %11 = vsyncpa [#allocation4 + $0x1], 0  ;;  %s506_s6 = smov 0   ;;  %s508_s7 = smov 0  }
   0x4   :  { %s510_s8 = smov 0   ;;  %s512_s9 = smov 0  }
   0x5 LB: > { %s527_s10 = sadd.s32 4294967295, %s488_s9   ;;  %s322_s11 = sadd.s32 4294967294, %s488_s9   ;;  %s488_s9 = sphi %s512_s9, %s725_s9   ;;  %s484_s8 = sphi %s510_s8, %s724_s8   ;;  %s480_s7 = sphi %s508_s7, %s723_s7   ;;  %s476_s6 = sphi %s506_s6, %s722_s6  }
   0x6   : > { %s531_s12 = sadd.s32 1, %s488_s9   ;;  %s24_s13 = sadd.s32 1, %s484_s8 }
   0x7   : > { %s21_s14 = ssub.s32 %s488_s9, %s531_s12  ;;  %p31_p0 = scmp.ne.s32.totalorder %s484_s8, %s480_s7 }
   0x8   : > { %p22_p1 = scmp.eq.s32.totalorder %s21_s14, 0  ;;  %p32_p2 = scmp.eq.s32.totalorder %s488_s9, 0 }
   0x9   : > { %p37_p3 = scmp.ne.s32.totalorder %s480_s7, %s476_s6  ;;  %p38_p4 = scmp.eq.s32.totalorder %s527_s10, 0 }
   0xa   : > { %s543_s15 = scalar_select %p22_p1, %s484_s8, %s24_s13  }
   0xb   : > { %p545_p5 = por %p32_p2, %p31_p0  ;;  %p549_p6 = por %p38_p4, %p37_p3 }
   0xc   : > { %p61_p7 = scmp.eq.s32.totalorder %s527_s10, 4  ;;  %p67_p8 = scmp.eq.s32.totalorder %s322_s11, 4 }
   0xd   : > { %p354_p9 = scmp.lt.s32.totalorder %s488_s9, 5  ;;  %s87_s20 = sand.u32 1, %s484_s8  }
   0xe   : > { %p555_p10 = por %p61_p7, %p31_p0  ;;  %p559_p11 = por %p67_p8, %p37_p3 }
   0xf   : > { %s339_s21 = sshll.u32 %s488_s9, 11  ;;  %s325_s22 = sshll.u32 %s87_s20, 7 }
  0x10   : > { %s717_s18 = scalar_select %p555_p10, 1, 0 }
  0x11   : > { %s718_s19 = scalar_select %p559_p11, 1, 0 }
  0x12   : > { %s568_s25 = scalar_lea.hbm %s712_s0, %s339_s21  ;;  %s91_s26 = scalar_lea.vmem [#allocation2], %s325_s22 }
  0x13   : > { %s99_s27 = sshll.u32 %s91_s26, 4  ;;  %p572_p12 = pnand %p354_p9, %p545_p5  ;;  %s576_s27 = int_to_ptr.vmem [resolvable:$true] %s99_s27 }
  0x14   : > { %s578_s29 = scalar_lea.sflag [#allocation3], %s87_s20  ;;  %s392_s30 = scalar_lea.hbm %s568_s25, 2048 }
  0x15   : > { %p393_p13 = scmp.ne.s32.totalorder %s568_s25, %s392_s30  ;;  %p394_p0 = pneg %p572_p12 }
  0x16   : > { %s397_s4 = scalar_lea.hbm %s712_s0, 10240  ;;  %p398_p3 = scmp.lt.u32.totalorder %s568_s25, %s712_s0 }
  0x17   : > { %p395_p1 = pnand %p394_p0, %p393_p13  ;;  %p399_p4 = scmp.lt.u32.totalorder %s397_s4, %s392_s30 }
  0x18   : > { %p401_p7 = scmp.lt.u32.totalorder %s392_s30, %s568_s25 }
  0x19   : > { %p396_p2 = pneg %p395_p1  ;;  %p400_p5 = por %p399_p4, %p398_p3 }
  0x1b   : > { %p402_p8 = por %p401_p7, %p400_p5 }
  0x1d   : > { %p403_p9 = pnand %p402_p8, %p396_p2 }
  0x1f   : > { %406 = shalt.err (!%p403_p9)
}
  0x20   : > { %s407_s13 = scalar_lea.vmem %s576_s27, 2048  ;;  %s490_s14 = smov [#allocation2]  }
  0x21   : > { %p408_p13 = scmp.ne.s32.totalorder %s576_s27, %s407_s13  ;;  %s412_s16 = sshll.u32 %s490_s14, 4  ;;  %s413_s16 = int_to_ptr.vmem [resolvable:$false] %s412_s16 }
  0x22   : > { %s414_s20 = scalar_lea.vmem %s413_s16, 4096  ;;  %p415_p10 = scmp.lt.s32.totalorder %s576_s27, %s413_s16 }
  0x23   : > { %p410_p1 = pnand %p408_p13, %p394_p0  ;;  %p416_p3 = scmp.lt.s32.totalorder %s414_s20, %s407_s13 }
  0x25   : > { %p411_p11 = pneg %p410_p1  ;;  %p417_p4 = por %p416_p3, %p415_p10 }
  0x27   : > { %p418_p5 = pnand %p417_p4, %p411_p11 }
  0x29   : > { %421 = shalt.err (!%p418_p5)
}
  0x2a   : > { %s491_s21 = smov 1024   ;;  %s492_s22 = smov 64  }
  0x2b   : > { %349 = dma.hbm_to_vmem [thread:$0]  (!%p572_p12), %s568_s25, 2048, %s576_s27, %s578_s29, %s491_s21, %s491_s21, %s492_s22  }
  0x2c   : > { %p329_p0 = scmp.ge.s32.totalorder %s488_s9, 1  ;;  %p107_p2 = scmp.lt.s32.totalorder %s488_s9, 6 }
  0x2e   : > { %p108_p7 = pnand %p329_p0, %p107_p2 }
  0x2f   : > { %s609_s23 = sand.u32 (!%p108_p7), 1, %s480_s7  }
  0x30   : > { %111 = sbr.rel (%p108_p7) target bundleno = 102 (0x66), region = 24  ;;  %s330_s24 = sshll.u32 (!%p108_p7), %s609_s23, 7 }
  0x31   : > { %s114_s26 = scalar_lea.sflag (!%p108_p7), [#allocation3], %s609_s23  ;;  %s613_s30 = scalar_lea.vmem (!%p108_p7), [#allocation2], %s330_s24 }
  0x37   : > { %467 = dma.done.wait (%p549_p6), %s114_s26, 2048  }
  0x38   : > { %469 = vsyncadd (%p549_p6), %s114_s26, 4294965248  ;;  %v138_v0 = vld [vmem:[%s613_s30] sm:$0xff]  ;;  %v139_v1 = vld [vmem:[%s613_s30 + $0x8] sm:$0xff]  ;;  %s626_s17 = scalar_lea.vmem [#allocation5], %s330_s24  ;;  %s341_s25 = sshll.u32 %s527_s10, 11 }
  0x39   : > { %v140_v2 = vld [vmem:[%s613_s30 + $0x10] sm:$0xff]  ;;  %v154_v3 = vmul.f32 0.33333334, %v138_v0  ;;  %vm186_vm0 = vcmp.gt.f32.partialorder %v138_v0, 0.7  ;;  %v141_v8 = vld [vmem:[%s613_s30 + $0x18] sm:$0xff]  ;;  %s664_s29 = scalar_lea.hbm %s713_s1, %s341_s25 }
  0x3a   : > { %v155_v4 = vmul.f32 0.33333334, %v139_v1  ;;  %vm187_vm1 = vcmp.gt.f32.partialorder %v139_v1, 0.7  ;;  %v156_v5 = vmul.f32 0.33333334, %v140_v2 }
  0x3b   : > { %vm188_vm2 = vcmp.gt.f32.partialorder %v140_v2, 0.7  ;;  %v170_v6 = vadd.f32 0.46666667, %v154_v3  ;;  %v142_v9 = vld [vmem:[%s613_s30 + $0x20] sm:$0xff]  ;;  %v143_v15 = vld [vmem:[%s613_s30 + $0x28] sm:$0xff] }
  0x3c   : > { %v171_v7 = vadd.f32 0.46666667, %v155_v4  ;;  %v172_v10 = vadd.f32 0.46666667, %v156_v5  ;;  %v157_v11 = vmul.f32 0.33333334, %v141_v8 }
  0x3d   : > { %vm189_vm3 = vcmp.gt.f32.partialorder %v141_v8, 0.7  ;;  %v202_v12 = vsel %vm186_vm0, %v170_v6, %v138_v0  ;;  %v158_v14 = vmul.f32 0.33333334, %v142_v9  ;;  %vm190_vm4 = vcmp.gt.f32.partialorder %v142_v9, 0.7 }
  0x3e   : > { %v203_v13 = vsel %vm187_vm1, %v171_v7, %v139_v1  ;;  %v144_v16 = vld [vmem:[%s613_s30 + $0x30] sm:$0xff]  ;;  %218 = vst [vmem:[%s626_s17] sm:$0xff] %v202_v12  ;;  %v204_v17 = vsel %vm188_vm2, %v172_v10, %v140_v2  ;;  %v173_v18 = vadd.f32 0.46666667, %v157_v11  ;;  %v159_v19 = vmul.f32 0.33333334, %v143_v15  ;;  %v145_v24 = vld [vmem:[%s613_s30 + $0x38] sm:$0xff] }
  0x3f   : > { %219 = vst [vmem:[%s626_s17 + $0x8] sm:$0xff] %v203_v13  ;;  %vm191_vm5 = vcmp.gt.f32.partialorder %v143_v15, 0.7  ;;  %220 = vst [vmem:[%s626_s17 + $0x10] sm:$0xff] %v204_v17  ;;  %v174_v20 = vadd.f32 0.46666667, %v158_v14 }
  0x40   : > { %v160_v21 = vmul.f32 0.33333334, %v144_v16  ;;  %vm192_vm6 = vcmp.gt.f32.partialorder %v144_v16, 0.7  ;;  %v205_v22 = vsel %vm189_vm3, %v173_v18, %v141_v8  ;;  %v175_v23 = vadd.f32 0.46666667, %v159_v19 }
  0x41   : > { %v146_v25 = vld [vmem:[%s613_s30 + $0x40] sm:$0xff]  ;;  %v147_v26 = vld [vmem:[%s613_s30 + $0x48] sm:$0xff]  ;;  %221 = vst [vmem:[%s626_s17 + $0x18] sm:$0xff] %v205_v22  ;;  %v206_v27 = vsel %vm190_vm4, %v174_v20, %v142_v9  ;;  %v161_v29 = vmul.f32 0.33333334, %v145_v24  ;;  %v148_v35 = vld [vmem:[%s613_s30 + $0x50] sm:$0xff] }
  0x42   : > { %v176_v28 = vadd.f32 0.46666667, %v160_v21  ;;  %vm193_vm7 = vcmp.gt.f32.partialorder %v145_v24, 0.7  ;;  %222 = vst [vmem:[%s626_s17 + $0x20] sm:$0xff] %v206_v27  ;;  %v207_v30 = vsel %vm191_vm5, %v175_v23, %v143_v15  ;;  %v149_v36 = vld [vmem:[%s613_s30 + $0x58] sm:$0xff] }
  0x43   : > { %v162_v31 = vmul.f32 0.33333334, %v146_v25  ;;  %vm194_vm8 = vcmp.gt.f32.partialorder %v146_v25, 0.7  ;;  %v163_v32 = vmul.f32 0.33333334, %v147_v26 }
  0x44   : > { %223 = vst [vmem:[%s626_s17 + $0x28] sm:$0xff] %v207_v30  ;;  %v208_v33 = vsel %vm192_vm6, %v176_v28, %v144_v16  ;;  %v177_v34 = vadd.f32 0.46666667, %v161_v29  ;;  %vm195_vm9 = vcmp.gt.f32.partialorder %v147_v26, 0.7  ;;  %v150_v45 = vld [vmem:[%s613_s30 + $0x60] sm:$0xff] }
  0x45   : > { %224 = vst [vmem:[%s626_s17 + $0x30] sm:$0xff] %v208_v33  ;;  %v178_v37 = vadd.f32 0.46666667, %v162_v31  ;;  %v179_v38 = vadd.f32 0.46666667, %v163_v32  ;;  %v151_v46 = vld [vmem:[%s613_s30 + $0x68] sm:$0xff] }
  0x46   : > { %v164_v39 = vmul.f32 0.33333334, %v148_v35  ;;  %v209_v40 = vsel %vm193_vm7, %v177_v34, %v145_v24  ;;  %vm196_vm10 = vcmp.gt.f32.partialorder %v148_v35, 0.7  ;;  %v165_v41 = vmul.f32 0.33333334, %v149_v36 }
  0x47   : > { %vm197_vm11 = vcmp.gt.f32.partialorder %v149_v36, 0.7  ;;  %225 = vst [vmem:[%s626_s17 + $0x38] sm:$0xff] %v209_v40  ;;  %v210_v42 = vsel %vm194_vm8, %v178_v37, %v146_v25  ;;  %v211_v43 = vsel %vm195_vm9, %v179_v38, %v147_v26  ;;  %v152_v47 = vld [vmem:[%s613_s30 + $0x70] sm:$0xff]  ;;  %v166_v49 = vmul.f32 0.33333334, %v150_v45 }
  0x48   : > { %v180_v44 = vadd.f32 0.46666667, %v164_v39  ;;  %226 = vst [vmem:[%s626_s17 + $0x40] sm:$0xff] %v210_v42  ;;  %227 = vst [vmem:[%s626_s17 + $0x48] sm:$0xff] %v211_v43  ;;  %v181_v48 = vadd.f32 0.46666667, %v165_v41 }
  0x49   : > { %vm198_vm12 = vcmp.gt.f32.partialorder %v150_v45, 0.7  ;;  %v167_v51 = vmul.f32 0.33333334, %v151_v46  ;;  %vm199_vm13 = vcmp.gt.f32.partialorder %v151_v46, 0.7 }
  0x4a   : > { %v212_v50 = vsel %vm196_vm10, %v180_v44, %v148_v35  ;;  %v168_v52 = vmul.f32 0.33333334, %v152_v47  ;;  %v213_v53 = vsel %vm197_vm11, %v181_v48, %v149_v36  ;;  %v182_v54 = vadd.f32 0.46666667, %v166_v49  ;;  %v153_v55 = vld [vmem:[%s613_s30 + $0x78] sm:$0xff]  ;;  %s249_s10 = sshll.u32 %s626_s17, 4  ;;  %s666_s10 = int_to_ptr.vmem [resolvable:$true] %s249_s10 }
  0x4b   : > { %228 = vst [vmem:[%s626_s17 + $0x50] sm:$0xff] %v212_v50  ;;  %vm200_vm14 = vcmp.gt.f32.partialorder %v152_v47, 0.7  ;;  %229 = vst [vmem:[%s626_s17 + $0x58] sm:$0xff] %v213_v53  ;;  %v183_v56 = vadd.f32 0.46666667, %v167_v51 }
  0x4c   : > { %v184_v57 = vadd.f32 0.46666667, %v168_v52  ;;  %v169_v58 = vmul.f32 0.33333334, %v153_v55  ;;  %v214_v59 = vsel %vm198_vm12, %v182_v54, %v150_v45  ;;  %vm201_vm15 = vcmp.gt.f32.partialorder %v153_v55, 0.7 }
  0x4d   : > { %230 = vst [vmem:[%s626_s17 + $0x60] sm:$0xff] %v214_v59  ;;  %v215_v60 = vsel %vm199_vm13, %v183_v56, %v151_v46  ;;  %s235_s2 = scalar_lea.sflag [#allocation4], %s609_s23  ;;  %s422_s3 = scalar_lea.vmem %s666_s10, 2048 }
  0x4e   : > { %v216_v61 = vsel %vm200_vm14, %v184_v57, %v152_v47  ;;  %v185_v62 = vadd.f32 0.46666667, %v169_v58  ;;  %231 = vst [vmem:[%s626_s17 + $0x68] sm:$0xff] %v215_v60  ;;  %p423_p6 = scmp.ne.s32.totalorder %s666_s10, %s422_s3  ;;  %p720_p10 = scmp.ne.s32.totalorder %s717_s18, 0 }
  0x4f   : > { %232 = vst [vmem:[%s626_s17 + $0x70] sm:$0xff] %v216_v61  ;;  %s493_s4 = smov [#allocation5]  }
  0x50   : > { %v217_v63 = vsel %vm201_vm15, %v185_v62, %v153_v55  ;;  %p424_p11 = pnand %p423_p6, %p720_p10  ;;  %s426_s5 = sshll.u32 %s493_s4, 4  ;;  %s427_s5 = int_to_ptr.vmem [resolvable:$false] %s426_s5 }
  0x51   : > { %233 = vst [vmem:[%s626_s17 + $0x78] sm:$0xff] %v217_v63  ;;  %s428_s11 = scalar_lea.vmem %s427_s5, 4096  ;;  %p429_p8 = scmp.lt.s32.totalorder %s666_s10, %s427_s5 }
  0x52   : > { %p425_p12 = pneg %p424_p11  ;;  %p430_p9 = scmp.lt.s32.totalorder %s428_s11, %s422_s3 }
  0x54   : > { %p431_p13 = por %p430_p9, %p429_p8 }
  0x56   : > { %p432_p1 = pnand %p431_p13, %p425_p12 }
  0x58   : > { %435 = shalt.err (!%p432_p1)
}
  0x59   : > { %s436_s13 = scalar_lea.hbm %s664_s29, 2048  ;;  %s440_s20 = scalar_lea.hbm %s713_s1, 10240 }
  0x5a   : > { %p437_p3 = scmp.ne.s32.totalorder %s664_s29, %s436_s13  ;;  %p441_p0 = scmp.lt.u32.totalorder %s664_s29, %s713_s1 }
  0x5b   : > { %p442_p2 = scmp.lt.u32.totalorder %s440_s20, %s436_s13  ;;  %p444_p6 = scmp.lt.u32.totalorder %s436_s13, %s664_s29 }
  0x5c   : > { %p438_p4 = pnand %p437_p3, %p720_p10 }
  0x5d   : > { %p443_p7 = por %p442_p2, %p441_p0 }
  0x5e   : > { %p439_p5 = pneg %p438_p4 }
  0x5f   : > { %p445_p11 = por %p444_p6, %p443_p7 }
  0x61   : > { %p446_p12 = pnand %p445_p11, %p439_p5 }
  0x63   : > { %449 = shalt.err (!%p446_p12)
}
  0x64   : > { %s494_s24 = smov 1024   ;;  %s495_s26 = smov 64  }
  0x65   : > { %344 = dma.vmem_to_hbm [thread:$0]  (%p720_p10), %s666_s10, 2048, %s664_s29, %s235_s2, %s494_s24, %s494_s24, %s495_s26  }
  0x66 PF: > { %p355_p8 = scmp.ge.s32.totalorder %s488_s9, 2  ;;  %s264_s30 = sand.u32 1, %s476_s6  }
  0x67   : > { %p721_p9 = scmp.ne.s32.totalorder %s718_s19, 0  ;;  %s265_s17 = scalar_lea.sflag [#allocation4], %s264_s30 }
  0x69   : > { %p351_p13 = pnand %p355_p8, %p721_p9 }
  0x6b   : > { %471 = dma.done.wait (!%p351_p13), %s265_s17, 2048  }
  0x6c   : > { %473 = vsyncadd (!%p351_p13), %s265_s17, 4294965248  ;;  %p14_p1 = scmp.ge.s32.totalorder %s531_s12, 7   ;;  %s722_s6 = smov %s480_s7 }
  0x6d   : > { %s723_s7 = smov %s484_s8  ;;  %s724_s8 = smov %s543_s15 }
  0x6e   : > { %s725_s9 = smov %s531_s12  ;;  %16 = sbr.rel (!%p14_p1) target bundleno = 5 (0x5), region = 69 }
  0x75   :  { %270 = vsyncpa [#allocation3], 1 }
  0x76   :  { %272 = vsyncpa [#allocation3 + $0x1], 1 }
  0x77   :  { %273 = vsyncpa [#allocation4], 1 }
  0x78   :  { %275 = vsyncpa [#allocation4 + $0x1], 1 }

</bundles_post_ra>
